<compile_context>
chip_gen: v6e
topology: v6e:2x2x1
jax: 0.10.0
libtpu: 0.0.40
codegen_flags: <defaults>
</compile_context>

<pallas_src>
import numpy as np
import jax
import jax.numpy as jnp
from jax import lax
from jax.experimental import pallas as pl
from jax.experimental.pallas import tpu as pltpu

START_TAG = "<START>"
STOP_TAG = "<STOP>"
EMO_TO_IX = {"ang": 0, "hap": 1, "neu": 2, "sad": 3, START_TAG: 4, STOP_TAG: 5}
TAGSET = len(EMO_TO_IX)          # 6
START_IX = EMO_TO_IX[START_TAG]
STOP_IX = EMO_TO_IX[STOP_TAG]
P_PAD = 8                        # prev-tag axis padded to one sublane group
N_PAD = 128                      # next-tag axis padded to one lane group
NEG = -1.0e9                     # "-inf" for padded tags


def viterbi_kernel(feats_ref, trans_ref, stop_ref, bptr_ref, term_ref):
    """Viterbi max-plus recursion for one sequence (grid axis = batch).

    feats_ref: (S, 128) f32   emission features, next-tag on lanes
    trans_ref: (8, 128) f32   transitions[prev, next] (pre-transposed), NEG-padded
    stop_ref : (1, 128) f32   transitions[STOP, prev] as a lane row
    bptr_ref : (S, 128) i32   backpointers[step, next] = best prev tag
    term_ref : (1, 128) f32   terminal viterbi variables
    """
    S = feats_ref.shape[0]
    trans = trans_ref[...]                                          # (8, 128)
    prev_iota = lax.broadcasted_iota(jnp.int32, (P_PAD, N_PAD), 0)  # [p, n] = p
    next_iota = lax.broadcasted_iota(jnp.int32, (P_PAD, N_PAD), 1)  # [p, n] = n
    eye = (prev_iota == next_iota).astype(jnp.float32)              # flip mask

    # Initial viterbi variables: -10000 everywhere, 0 at START (row-constant).
    fv = jnp.where(prev_iota == START_IX, 0.0, -10000.0)            # (8, 128)
    fv_row = jnp.zeros((1, N_PAD), jnp.float32)

    for t in range(S):                                              # fully unrolled
        scores = trans + fv                                         # [prev, next]
        best = jnp.max(scores, axis=0, keepdims=True)               # (1,128) over prev
        cand = jnp.where(scores == best, prev_iota, P_PAD)
        bptr_ref[pl.ds(t, 1), :] = jnp.min(cand, axis=0,            # first maximal prev
                                           keepdims=True).astype(jnp.int32)
        fv_row = best + feats_ref[pl.ds(t, 1), :]                   # (1,128) next-indexed
        # flip lanes -> sublanes for the next step: exact mask-and-sum (single vreg)
        fv = jnp.sum(jnp.broadcast_to(fv_row, (P_PAD, N_PAD)) * eye,
                     axis=1, keepdims=True)                         # (8, 1)

    term_ref[...] = fv_row + stop_ref[...]


def viterbi_pallas(feats, transitions):
    """feats: (B, S, TAGSET) f32, transitions: (TAGSET, TAGSET) f32."""
    B, S, _ = feats.shape
    feats_pad = jnp.zeros((B, S, N_PAD), jnp.float32).at[:, :, :TAGSET].set(feats)
    trans_f32 = jnp.asarray(transitions, jnp.float32)
    trans_pn = (jnp.full((P_PAD, N_PAD), NEG, jnp.float32)          # [prev, next]
                .at[:TAGSET, :TAGSET].set(trans_f32.T))
    stop_row = (jnp.full((1, N_PAD), NEG, jnp.float32)
                .at[0, :TAGSET].set(trans_f32[STOP_IX]))

    bptr, term = pl.pallas_call(
        viterbi_kernel,
        out_shape=(jax.ShapeDtypeStruct((B, S, N_PAD), jnp.int32),
                   jax.ShapeDtypeStruct((B, 1, N_PAD), jnp.float32)),
        grid=(B,),
        in_specs=[pl.BlockSpec((None, S, N_PAD), lambda b: (b, 0, 0)),
                  pl.BlockSpec((P_PAD, N_PAD), lambda b: (0, 0)),
                  pl.BlockSpec((1, N_PAD), lambda b: (0, 0))],
        out_specs=(pl.BlockSpec((None, S, N_PAD), lambda b: (b, 0, 0)),
                   pl.BlockSpec((None, 1, N_PAD), lambda b: (b, 0, 0))),
        compiler_params=pltpu.CompilerParams(dimension_semantics=("parallel",)),
    )(feats_pad, trans_pn, stop_row)
    return bptr, term


def get_pretrain_model_features(sentences, out_table):
    # TODO(synk): original code looks up out_dict[ix_to_utt[token]] (external
    # pretrained-model outputs); replaced by a deterministic in-script table.
    B, S = sentences.shape
    feats = jnp.zeros((B, S, TAGSET), jnp.float32)
    feats = feats.at[:, :, :4].set(out_table[sentences])
    first = jnp.full((S,), -3.0, jnp.float32).at[0].set(3.0)
    last = jnp.full((S,), -3.0, jnp.float32).at[S - 1].set(3.0)
    feats = feats.at[:, :, 4].set(first)
    feats = feats.at[:, :, 5].set(last)
    return feats


def crf_forward_batch(sentences, transitions, out_table):
    feats = get_pretrain_model_features(sentences, out_table)
    bptr, term = viterbi_pallas(feats, transitions)
    bptr = np.asarray(jax.block_until_ready(bptr))[:, :, :TAGSET]
    term = np.asarray(term)[:, 0, :TAGSET]
    B, S = sentences.shape
    results = []
    for b in range(B):
        best_tag = int(np.argmax(term[b]))
        path_score = float(term[b, best_tag])
        best_path = [best_tag]
        for t in range(S - 1, -1, -1):         # backtrace (host, tiny)
            best_tag = int(bptr[b, t, best_tag])
            best_path.append(best_tag)
        start = best_path.pop()
        assert start == START_IX
        best_path.reverse()
        results.append((path_score, best_path))
    return results


def crf_forward(sentence, transitions, out_table):
    # single-sequence forward() matching the PyTorch module signature
    (res,) = crf_forward_batch(sentence[None, :], transitions, out_table)
    return res


def viterbi_ref(feats, transitions):
    # Pure-numpy mirror of the PyTorch _viterbi_decode for verification.
    feats = np.asarray(feats, np.float32)
    trans = np.asarray(transitions, np.float32)
    fv = np.full((TAGSET,), -10000.0, np.float32)
    fv[START_IX] = 0.0
    backptrs = []
    for feat in feats:
        nv = np.zeros(TAGSET, np.float32)
        bp = np.zeros(TAGSET, np.int64)
        for nxt in range(TAGSET):
            v = fv + trans[nxt]
            bp[nxt] = int(np.argmax(v))
            nv[nxt] = v[bp[nxt]]
        fv = nv + feat
        backptrs.append(bp)
    term = fv + trans[STOP_IX]
    best = int(np.argmax(term))
    score = float(term[best])
    path = [best]
    for bp in reversed(backptrs):
        best = int(bp[best])
        path.append(best)
    start = path.pop()
    assert start == START_IX
    path.reverse()
    return score, path


if __name__ == "__main__":
    key = jax.random.PRNGKey(0)
    k1, k2, k3 = jax.random.split(key, 3)
    vocab_size = 16
    seq_len = 8
    batch = 4

    transitions = jax.random.normal(k1, (TAGSET, TAGSET), jnp.float32)
    out_table = jax.random.normal(k2, (vocab_size, 4), jnp.float32)
    sentences = jax.random.randint(k3, (batch, seq_len), 0, vocab_size)

    results = crf_forward_batch(sentences, transitions, out_table)

    feats_np = np.asarray(get_pretrain_model_features(sentences, out_table))
    trans_np = np.asarray(transitions)
    for b in range(batch):
        ref_score, ref_path = viterbi_ref(feats_np[b], trans_np)
        score, path = results[b]
        assert path == ref_path, (b, path, ref_path)
        assert abs(score - ref_score) < 1e-3 * max(1.0, abs(ref_score)), (b, score, ref_score)

    # also exercise the single-sequence forward() path
    s_score, s_path = crf_forward(sentences[0], transitions, out_table)
    assert s_path == results[0][1]
    print("KERNEL_OK")
</pallas_src>

<mosaic_0001>
module attributes {stable_mosaic.version = 11 : i64} {
  func.func @viterbi_kernel(%arg0: i32, %arg1: memref<1x8x128xf32, #tpu.memory_space<vmem>>, %arg2: memref<8x128xf32, #tpu.memory_space<vmem>>, %arg3: memref<1x128xf32, #tpu.memory_space<vmem>>, %arg4: memref<1x8x128xi32, #tpu.memory_space<vmem>>, %arg5: memref<1x1x128xf32, #tpu.memory_space<vmem>>) attributes {dimension_semantics = [#tpu.dimension_semantics<parallel>], iteration_bounds = array<i64: 4>, scalar_prefetch = 0 : i64, scratch_operands = 0 : i64, tpu.core_type = #tpu.core_type<tc>, window_params = [{transform_indices = @transform_0, window_bounds = array<i64: 1, 8, 128>}, {pipeline_mode = #tpu.pipeline_mode<synchronous>, transform_indices = @transform_1, window_bounds = array<i64: 8, 128>}, {pipeline_mode = #tpu.pipeline_mode<synchronous>, transform_indices = @transform_2, window_bounds = array<i64: 1, 128>}, {transform_indices = @transform_3, window_bounds = array<i64: 1, 8, 128>}, {transform_indices = @transform_4, window_bounds = array<i64: 1, 1, 128>}]} {
    %c0 = arith.constant 0 : index
    %c0_0 = arith.constant 0 : index
    %0 = vector.load %arg2[%c0, %c0_0] : memref<8x128xf32, #tpu.memory_space<vmem>>, vector<8x128xf32>
    %1 = tpu.iota {dimensions = array<i32: 0>} : vector<8x128xi32>
    %2 = tpu.iota {dimensions = array<i32: 1>} : vector<8x128xi32>
    %3 = arith.cmpi eq, %1, %2 : vector<8x128xi32>
    %4 = arith.extui %3 : vector<8x128xi1> to vector<8x128xi32>
    %5 = arith.sitofp %4 : vector<8x128xi32> to vector<8x128xf32>
    %c4_i32 = arith.constant 4 : i32
    %6 = vector.broadcast %c4_i32 : i32 to vector<8x128xi32>
    %7 = arith.cmpi eq, %1, %6 : vector<8x128xi32>
    %cst = arith.constant 0.000000e+00 : f32
    %cst_1 = arith.constant -1.000000e+04 : f32
    %8 = vector.broadcast %cst : f32 to vector<8x128xf32>
    %9 = vector.broadcast %cst_1 : f32 to vector<8x128xf32>
    %10 = arith.select %7, %8, %9 : vector<8x128xi1>, vector<8x128xf32>
    %11 = arith.addf %0, %10 : vector<8x128xf32>
    %cst_2 = arith.constant dense<0xFF800000> : vector<128xf32>
    %12 = vector.multi_reduction <maximumf>, %11, %cst_2 [0] : vector<8x128xf32> to vector<128xf32>
    %13 = vector.shape_cast %12 : vector<128xf32> to vector<1x128xf32>
    %14 = vector.broadcast %13 : vector<1x128xf32> to vector<8x128xf32>
    %15 = arith.cmpf oeq, %11, %14 : vector<8x128xf32>
    %c8_i32 = arith.constant 8 : i32
    %16 = vector.broadcast %c8_i32 : i32 to vector<8x128xi32>
    %17 = arith.select %15, %1, %16 : vector<8x128xi1>, vector<8x128xi32>
    %cst_3 = arith.constant dense<2147483647> : vector<128xi32>
    %18 = vector.multi_reduction <minsi>, %17, %cst_3 [0] : vector<8x128xi32> to vector<128xi32>
    %19 = vector.shape_cast %18 : vector<128xi32> to vector<1x128xi32>
    %c0_4 = arith.constant 0 : index
    %c0_5 = arith.constant 0 : index
    %c0_6 = arith.constant 0 : index
    %20 = vector.load %arg4[%c0_4, %c0_5, %c0_6] : memref<1x8x128xi32, #tpu.memory_space<vmem>>, vector<1x1x128xi32>
    %21 = vector.shape_cast %20 : vector<1x1x128xi32> to vector<1x128xi32>
    %22 = vector.shape_cast %19 : vector<1x128xi32> to vector<1x1x128xi32>
    tpu.vector_store %arg4[%c0_4, %c0_5, %c0_6], %22 {strides = array<i32>} : memref<1x8x128xi32, #tpu.memory_space<vmem>>, vector<1x1x128xi32>,
    %c0_7 = arith.constant 0 : index
    %c0_8 = arith.constant 0 : index
    %c0_9 = arith.constant 0 : index
    %23 = vector.load %arg1[%c0_7, %c0_8, %c0_9] : memref<1x8x128xf32, #tpu.memory_space<vmem>>, vector<1x1x128xf32>
    %24 = vector.shape_cast %23 : vector<1x1x128xf32> to vector<1x128xf32>
    %25 = arith.addf %13, %24 : vector<1x128xf32>
    %26 = vector.shape_cast %25 : vector<1x128xf32> to vector<1x128xf32>
    %27 = vector.broadcast %26 : vector<1x128xf32> to vector<8x128xf32>
    %28 = arith.mulf %27, %5 : vector<8x128xf32>
    %cst_10 = arith.constant dense<0.000000e+00> : vector<8xf32>
    %29 = vector.multi_reduction <add>, %28, %cst_10 [1] : vector<8x128xf32> to vector<8xf32>
    %30 = vector.shape_cast %29 : vector<8xf32> to vector<8x1xf32>
    %31 = vector.broadcast %30 : vector<8x1xf32> to vector<8x128xf32>
    %32 = arith.addf %0, %31 : vector<8x128xf32>
    %cst_11 = arith.constant dense<0xFF800000> : vector<128xf32>
    %33 = vector.multi_reduction <maximumf>, %32, %cst_11 [0] : vector<8x128xf32> to vector<128xf32>
    %34 = vector.shape_cast %33 : vector<128xf32> to vector<1x128xf32>
    %35 = vector.broadcast %34 : vector<1x128xf32> to vector<8x128xf32>
    %36 = arith.cmpf oeq, %32, %35 : vector<8x128xf32>
    %c8_i32_12 = arith.constant 8 : i32
    %37 = vector.broadcast %c8_i32_12 : i32 to vector<8x128xi32>
    %38 = arith.select %36, %1, %37 : vector<8x128xi1>, vector<8x128xi32>
    %cst_13 = arith.constant dense<2147483647> : vector<128xi32>
    %39 = vector.multi_reduction <minsi>, %38, %cst_13 [0] : vector<8x128xi32> to vector<128xi32>
    %40 = vector.shape_cast %39 : vector<128xi32> to vector<1x128xi32>
    %c0_14 = arith.constant 0 : index
    %c1 = arith.constant 1 : index
    %c0_15 = arith.constant 0 : index
    %41 = vector.load %arg4[%c0_14, %c1, %c0_15] : memref<1x8x128xi32, #tpu.memory_space<vmem>>, vector<1x1x128xi32>
    %42 = vector.shape_cast %41 : vector<1x1x128xi32> to vector<1x128xi32>
    %43 = vector.shape_cast %40 : vector<1x128xi32> to vector<1x1x128xi32>
    tpu.vector_store %arg4[%c0_14, %c1, %c0_15], %43 {strides = array<i32>} : memref<1x8x128xi32, #tpu.memory_space<vmem>>, vector<1x1x128xi32>,
    %c0_16 = arith.constant 0 : index
    %c1_17 = arith.constant 1 : index
    %c0_18 = arith.constant 0 : index
    %44 = vector.load %arg1[%c0_16, %c1_17, %c0_18] : memref<1x8x128xf32, #tpu.memory_space<vmem>>, vector<1x1x128xf32>
    %45 = vector.shape_cast %44 : vector<1x1x128xf32> to vector<1x128xf32>
    %46 = arith.addf %34, %45 : vector<1x128xf32>
    %47 = vector.shape_cast %46 : vector<1x128xf32> to vector<1x128xf32>
    %48 = vector.broadcast %47 : vector<1x128xf32> to vector<8x128xf32>
    %49 = arith.mulf %48, %5 : vector<8x128xf32>
    %cst_19 = arith.constant dense<0.000000e+00> : vector<8xf32>
    %50 = vector.multi_reduction <add>, %49, %cst_19 [1] : vector<8x128xf32> to vector<8xf32>
    %51 = vector.shape_cast %50 : vector<8xf32> to vector<8x1xf32>
    %52 = vector.broadcast %51 : vector<8x1xf32> to vector<8x128xf32>
    %53 = arith.addf %0, %52 : vector<8x128xf32>
    %cst_20 = arith.constant dense<0xFF800000> : vector<128xf32>
    %54 = vector.multi_reduction <maximumf>, %53, %cst_20 [0] : vector<8x128xf32> to vector<128xf32>
    %55 = vector.shape_cast %54 : vector<128xf32> to vector<1x128xf32>
    %56 = vector.broadcast %55 : vector<1x128xf32> to vector<8x128xf32>
    %57 = arith.cmpf oeq, %53, %56 : vector<8x128xf32>
    %c8_i32_21 = arith.constant 8 : i32
    %58 = vector.broadcast %c8_i32_21 : i32 to vector<8x128xi32>
    %59 = arith.select %57, %1, %58 : vector<8x128xi1>, vector<8x128xi32>
    %cst_22 = arith.constant dense<2147483647> : vector<128xi32>
    %60 = vector.multi_reduction <minsi>, %59, %cst_22 [0] : vector<8x128xi32> to vector<128xi32>
    %61 = vector.shape_cast %60 : vector<128xi32> to vector<1x128xi32>
    %c0_23 = arith.constant 0 : index
    %c2 = arith.constant 2 : index
    %c0_24 = arith.constant 0 : index
    %62 = vector.load %arg4[%c0_23, %c2, %c0_24] : memref<1x8x128xi32, #tpu.memory_space<vmem>>, vector<1x1x128xi32>
    %63 = vector.shape_cast %62 : vector<1x1x128xi32> to vector<1x128xi32>
    %64 = vector.shape_cast %61 : vector<1x128xi32> to vector<1x1x128xi32>
    tpu.vector_store %arg4[%c0_23, %c2, %c0_24], %64 {strides = array<i32>} : memref<1x8x128xi32, #tpu.memory_space<vmem>>, vector<1x1x128xi32>,
    %c0_25 = arith.constant 0 : index
    %c2_26 = arith.constant 2 : index
    %c0_27 = arith.constant 0 : index
    %65 = vector.load %arg1[%c0_25, %c2_26, %c0_27] : memref<1x8x128xf32, #tpu.memory_space<vmem>>, vector<1x1x128xf32>
    %66 = vector.shape_cast %65 : vector<1x1x128xf32> to vector<1x128xf32>
    %67 = arith.addf %55, %66 : vector<1x128xf32>
    %68 = vector.shape_cast %67 : vector<1x128xf32> to vector<1x128xf32>
    %69 = vector.broadcast %68 : vector<1x128xf32> to vector<8x128xf32>
    %70 = arith.mulf %69, %5 : vector<8x128xf32>
    %cst_28 = arith.constant dense<0.000000e+00> : vector<8xf32>
    %71 = vector.multi_reduction <add>, %70, %cst_28 [1] : vector<8x128xf32> to vector<8xf32>
    %72 = vector.shape_cast %71 : vector<8xf32> to vector<8x1xf32>
    %73 = vector.broadcast %72 : vector<8x1xf32> to vector<8x128xf32>
    %74 = arith.addf %0, %73 : vector<8x128xf32>
    %cst_29 = arith.constant dense<0xFF800000> : vector<128xf32>
    %75 = vector.multi_reduction <maximumf>, %74, %cst_29 [0] : vector<8x128xf32> to vector<128xf32>
    %76 = vector.shape_cast %75 : vector<128xf32> to vector<1x128xf32>
    %77 = vector.broadcast %76 : vector<1x128xf32> to vector<8x128xf32>
    %78 = arith.cmpf oeq, %74, %77 : vector<8x128xf32>
    %c8_i32_30 = arith.constant 8 : i32
    %79 = vector.broadcast %c8_i32_30 : i32 to vector<8x128xi32>
    %80 = arith.select %78, %1, %79 : vector<8x128xi1>, vector<8x128xi32>
    %cst_31 = arith.constant dense<2147483647> : vector<128xi32>
    %81 = vector.multi_reduction <minsi>, %80, %cst_31 [0] : vector<8x128xi32> to vector<128xi32>
    %82 = vector.shape_cast %81 : vector<128xi32> to vector<1x128xi32>
    %c0_32 = arith.constant 0 : index
    %c3 = arith.constant 3 : index
    %c0_33 = arith.constant 0 : index
    %83 = vector.load %arg4[%c0_32, %c3, %c0_33] : memref<1x8x128xi32, #tpu.memory_space<vmem>>, vector<1x1x128xi32>
    %84 = vector.shape_cast %83 : vector<1x1x128xi32> to vector<1x128xi32>
    %85 = vector.shape_cast %82 : vector<1x128xi32> to vector<1x1x128xi32>
    tpu.vector_store %arg4[%c0_32, %c3, %c0_33], %85 {strides = array<i32>} : memref<1x8x128xi32, #tpu.memory_space<vmem>>, vector<1x1x128xi32>,
    %c0_34 = arith.constant 0 : index
    %c3_35 = arith.constant 3 : index
    %c0_36 = arith.constant 0 : index
    %86 = vector.load %arg1[%c0_34, %c3_35, %c0_36] : memref<1x8x128xf32, #tpu.memory_space<vmem>>, vector<1x1x128xf32>
    %87 = vector.shape_cast %86 : vector<1x1x128xf32> to vector<1x128xf32>
    %88 = arith.addf %76, %87 : vector<1x128xf32>
    %89 = vector.shape_cast %88 : vector<1x128xf32> to vector<1x128xf32>
    %90 = vector.broadcast %89 : vector<1x128xf32> to vector<8x128xf32>
    %91 = arith.mulf %90, %5 : vector<8x128xf32>
    %cst_37 = arith.constant dense<0.000000e+00> : vector<8xf32>
    %92 = vector.multi_reduction <add>, %91, %cst_37 [1] : vector<8x128xf32> to vector<8xf32>
    %93 = vector.shape_cast %92 : vector<8xf32> to vector<8x1xf32>
    %94 = vector.broadcast %93 : vector<8x1xf32> to vector<8x128xf32>
    %95 = arith.addf %0, %94 : vector<8x128xf32>
    %cst_38 = arith.constant dense<0xFF800000> : vector<128xf32>
    %96 = vector.multi_reduction <maximumf>, %95, %cst_38 [0] : vector<8x128xf32> to vector<128xf32>
    %97 = vector.shape_cast %96 : vector<128xf32> to vector<1x128xf32>
    %98 = vector.broadcast %97 : vector<1x128xf32> to vector<8x128xf32>
    %99 = arith.cmpf oeq, %95, %98 : vector<8x128xf32>
    %c8_i32_39 = arith.constant 8 : i32
    %100 = vector.broadcast %c8_i32_39 : i32 to vector<8x128xi32>
    %101 = arith.select %99, %1, %100 : vector<8x128xi1>, vector<8x128xi32>
    %cst_40 = arith.constant dense<2147483647> : vector<128xi32>
    %102 = vector.multi_reduction <minsi>, %101, %cst_40 [0] : vector<8x128xi32> to vector<128xi32>
    %103 = vector.shape_cast %102 : vector<128xi32> to vector<1x128xi32>
    %c0_41 = arith.constant 0 : index
    %c4 = arith.constant 4 : index
    %c0_42 = arith.constant 0 : index
    %104 = vector.load %arg4[%c0_41, %c4, %c0_42] : memref<1x8x128xi32, #tpu.memory_space<vmem>>, vector<1x1x128xi32>
    %105 = vector.shape_cast %104 : vector<1x1x128xi32> to vector<1x128xi32>
    %106 = vector.shape_cast %103 : vector<1x128xi32> to vector<1x1x128xi32>
    tpu.vector_store %arg4[%c0_41, %c4, %c0_42], %106 {strides = array<i32>} : memref<1x8x128xi32, #tpu.memory_space<vmem>>, vector<1x1x128xi32>,
    %c0_43 = arith.constant 0 : index
    %c4_44 = arith.constant 4 : index
    %c0_45 = arith.constant 0 : index
    %107 = vector.load %arg1[%c0_43, %c4_44, %c0_45] : memref<1x8x128xf32, #tpu.memory_space<vmem>>, vector<1x1x128xf32>
    %108 = vector.shape_cast %107 : vector<1x1x128xf32> to vector<1x128xf32>
    %109 = arith.addf %97, %108 : vector<1x128xf32>
    %110 = vector.shape_cast %109 : vector<1x128xf32> to vector<1x128xf32>
    %111 = vector.broadcast %110 : vector<1x128xf32> to vector<8x128xf32>
    %112 = arith.mulf %111, %5 : vector<8x128xf32>
    %cst_46 = arith.constant dense<0.000000e+00> : vector<8xf32>
    %113 = vector.multi_reduction <add>, %112, %cst_46 [1] : vector<8x128xf32> to vector<8xf32>
    %114 = vector.shape_cast %113 : vector<8xf32> to vector<8x1xf32>
    %115 = vector.broadcast %114 : vector<8x1xf32> to vector<8x128xf32>
    %116 = arith.addf %0, %115 : vector<8x128xf32>
    %cst_47 = arith.constant dense<0xFF800000> : vector<128xf32>
    %117 = vector.multi_reduction <maximumf>, %116, %cst_47 [0] : vector<8x128xf32> to vector<128xf32>
    %118 = vector.shape_cast %117 : vector<128xf32> to vector<1x128xf32>
    %119 = vector.broadcast %118 : vector<1x128xf32> to vector<8x128xf32>
    %120 = arith.cmpf oeq, %116, %119 : vector<8x128xf32>
    %c8_i32_48 = arith.constant 8 : i32
    %121 = vector.broadcast %c8_i32_48 : i32 to vector<8x128xi32>
    %122 = arith.select %120, %1, %121 : vector<8x128xi1>, vector<8x128xi32>
    %cst_49 = arith.constant dense<2147483647> : vector<128xi32>
    %123 = vector.multi_reduction <minsi>, %122, %cst_49 [0] : vector<8x128xi32> to vector<128xi32>
    %124 = vector.shape_cast %123 : vector<128xi32> to vector<1x128xi32>
    %c0_50 = arith.constant 0 : index
    %c5 = arith.constant 5 : index
    %c0_51 = arith.constant 0 : index
    %125 = vector.load %arg4[%c0_50, %c5, %c0_51] : memref<1x8x128xi32, #tpu.memory_space<vmem>>, vector<1x1x128xi32>
    %126 = vector.shape_cast %125 : vector<1x1x128xi32> to vector<1x128xi32>
    %127 = vector.shape_cast %124 : vector<1x128xi32> to vector<1x1x128xi32>
    tpu.vector_store %arg4[%c0_50, %c5, %c0_51], %127 {strides = array<i32>} : memref<1x8x128xi32, #tpu.memory_space<vmem>>, vector<1x1x128xi32>,
    %c0_52 = arith.constant 0 : index
    %c5_53 = arith.constant 5 : index
    %c0_54 = arith.constant 0 : index
    %128 = vector.load %arg1[%c0_52, %c5_53, %c0_54] : memref<1x8x128xf32, #tpu.memory_space<vmem>>, vector<1x1x128xf32>
    %129 = vector.shape_cast %128 : vector<1x1x128xf32> to vector<1x128xf32>
    %130 = arith.addf %118, %129 : vector<1x128xf32>
    %131 = vector.shape_cast %130 : vector<1x128xf32> to vector<1x128xf32>
    %132 = vector.broadcast %131 : vector<1x128xf32> to vector<8x128xf32>
    %133 = arith.mulf %132, %5 : vector<8x128xf32>
    %cst_55 = arith.constant dense<0.000000e+00> : vector<8xf32>
    %134 = vector.multi_reduction <add>, %133, %cst_55 [1] : vector<8x128xf32> to vector<8xf32>
    %135 = vector.shape_cast %134 : vector<8xf32> to vector<8x1xf32>
    %136 = vector.broadcast %135 : vector<8x1xf32> to vector<8x128xf32>
    %137 = arith.addf %0, %136 : vector<8x128xf32>
    %cst_56 = arith.constant dense<0xFF800000> : vector<128xf32>
    %138 = vector.multi_reduction <maximumf>, %137, %cst_56 [0] : vector<8x128xf32> to vector<128xf32>
    %139 = vector.shape_cast %138 : vector<128xf32> to vector<1x128xf32>
    %140 = vector.broadcast %139 : vector<1x128xf32> to vector<8x128xf32>
    %141 = arith.cmpf oeq, %137, %140 : vector<8x128xf32>
    %c8_i32_57 = arith.constant 8 : i32
    %142 = vector.broadcast %c8_i32_57 : i32 to vector<8x128xi32>
    %143 = arith.select %141, %1, %142 : vector<8x128xi1>, vector<8x128xi32>
    %cst_58 = arith.constant dense<2147483647> : vector<128xi32>
    %144 = vector.multi_reduction <minsi>, %143, %cst_58 [0] : vector<8x128xi32> to vector<128xi32>
    %145 = vector.shape_cast %144 : vector<128xi32> to vector<1x128xi32>
    %c0_59 = arith.constant 0 : index
    %c6 = arith.constant 6 : index
    %c0_60 = arith.constant 0 : index
    %146 = vector.load %arg4[%c0_59, %c6, %c0_60] : memref<1x8x128xi32, #tpu.memory_space<vmem>>, vector<1x1x128xi32>
    %147 = vector.shape_cast %146 : vector<1x1x128xi32> to vector<1x128xi32>
    %148 = vector.shape_cast %145 : vector<1x128xi32> to vector<1x1x128xi32>
    tpu.vector_store %arg4[%c0_59, %c6, %c0_60], %148 {strides = array<i32>} : memref<1x8x128xi32, #tpu.memory_space<vmem>>, vector<1x1x128xi32>,
    %c0_61 = arith.constant 0 : index
    %c6_62 = arith.constant 6 : index
    %c0_63 = arith.constant 0 : index
    %149 = vector.load %arg1[%c0_61, %c6_62, %c0_63] : memref<1x8x128xf32, #tpu.memory_space<vmem>>, vector<1x1x128xf32>
    %150 = vector.shape_cast %149 : vector<1x1x128xf32> to vector<1x128xf32>
    %151 = arith.addf %139, %150 : vector<1x128xf32>
    %152 = vector.shape_cast %151 : vector<1x128xf32> to vector<1x128xf32>
    %153 = vector.broadcast %152 : vector<1x128xf32> to vector<8x128xf32>
    %154 = arith.mulf %153, %5 : vector<8x128xf32>
    %cst_64 = arith.constant dense<0.000000e+00> : vector<8xf32>
    %155 = vector.multi_reduction <add>, %154, %cst_64 [1] : vector<8x128xf32> to vector<8xf32>
    %156 = vector.shape_cast %155 : vector<8xf32> to vector<8x1xf32>
    %157 = vector.broadcast %156 : vector<8x1xf32> to vector<8x128xf32>
    %158 = arith.addf %0, %157 : vector<8x128xf32>
    %cst_65 = arith.constant dense<0xFF800000> : vector<128xf32>
    %159 = vector.multi_reduction <maximumf>, %158, %cst_65 [0] : vector<8x128xf32> to vector<128xf32>
    %160 = vector.shape_cast %159 : vector<128xf32> to vector<1x128xf32>
    %161 = vector.broadcast %160 : vector<1x128xf32> to vector<8x128xf32>
    %162 = arith.cmpf oeq, %158, %161 : vector<8x128xf32>
    %c8_i32_66 = arith.constant 8 : i32
    %163 = vector.broadcast %c8_i32_66 : i32 to vector<8x128xi32>
    %164 = arith.select %162, %1, %163 : vector<8x128xi1>, vector<8x128xi32>
    %cst_67 = arith.constant dense<2147483647> : vector<128xi32>
    %165 = vector.multi_reduction <minsi>, %164, %cst_67 [0] : vector<8x128xi32> to vector<128xi32>
    %166 = vector.shape_cast %165 : vector<128xi32> to vector<1x128xi32>
    %c0_68 = arith.constant 0 : index
    %c7 = arith.constant 7 : index
    %c0_69 = arith.constant 0 : index
    %167 = vector.load %arg4[%c0_68, %c7, %c0_69] : memref<1x8x128xi32, #tpu.memory_space<vmem>>, vector<1x1x128xi32>
    %168 = vector.shape_cast %167 : vector<1x1x128xi32> to vector<1x128xi32>
    %169 = vector.shape_cast %166 : vector<1x128xi32> to vector<1x1x128xi32>
    tpu.vector_store %arg4[%c0_68, %c7, %c0_69], %169 {strides = array<i32>} : memref<1x8x128xi32, #tpu.memory_space<vmem>>, vector<1x1x128xi32>,
    %c0_70 = arith.constant 0 : index
    %c7_71 = arith.constant 7 : index
    %c0_72 = arith.constant 0 : index
    %170 = vector.load %arg1[%c0_70, %c7_71, %c0_72] : memref<1x8x128xf32, #tpu.memory_space<vmem>>, vector<1x1x128xf32>
    %171 = vector.shape_cast %170 : vector<1x1x128xf32> to vector<1x128xf32>
    %172 = arith.addf %160, %171 : vector<1x128xf32>
    %c0_73 = arith.constant 0 : index
    %c0_74 = arith.constant 0 : index
    %173 = vector.load %arg3[%c0_73, %c0_74] : memref<1x128xf32, #tpu.memory_space<vmem>>, vector<1x128xf32>
    %174 = arith.addf %172, %173 : vector<1x128xf32>
    %c0_75 = arith.constant 0 : index
    %c0_76 = arith.constant 0 : index
    %c0_77 = arith.constant 0 : index
    %175 = vector.load %arg5[%c0_75, %c0_76, %c0_77] : memref<1x1x128xf32, #tpu.memory_space<vmem>>, vector<1x1x128xf32>
    %176 = vector.shape_cast %175 : vector<1x1x128xf32> to vector<1x128xf32>
    %177 = vector.shape_cast %174 : vector<1x128xf32> to vector<1x1x128xf32>
    tpu.vector_store %arg5[%c0_75, %c0_76, %c0_77], %177 {strides = array<i32>} : memref<1x1x128xf32, #tpu.memory_space<vmem>>, vector<1x1x128xf32>,
    return
  }
  func.func @transform_0(%arg0: i32) -> (i32, i32, i32) {
    %c0_i32 = arith.constant 0 : i32
    %c0_i32_0 = arith.constant 0 : i32
    %c0_i32_1 = arith.constant 0 : i32
    return %arg0, %c0_i32, %c0_i32_0 : i32, i32, i32
  }
  func.func @transform_1(%arg0: i32) -> (i32, i32) {
    %c0_i32 = arith.constant 0 : i32
    %c0_i32_0 = arith.constant 0 : i32
    %c0_i32_1 = arith.constant 0 : i32
    return %c0_i32, %c0_i32_0 : i32, i32
  }
  func.func @transform_2(%arg0: i32) -> (i32, i32) {
    %c0_i32 = arith.constant 0 : i32
    %c0_i32_0 = arith.constant 0 : i32
    %c0_i32_1 = arith.constant 0 : i32
    return %c0_i32, %c0_i32_0 : i32, i32
  }
  func.func @transform_3(%arg0: i32) -> (i32, i32, i32) {
    %c0_i32 = arith.constant 0 : i32
    %c0_i32_0 = arith.constant 0 : i32
    %c0_i32_1 = arith.constant 0 : i32
    return %arg0, %c0_i32, %c0_i32_0 : i32, i32, i32
  }
  func.func @transform_4(%arg0: i32) -> (i32, i32, i32) {
    %c0_i32 = arith.constant 0 : i32
    %c0_i32_0 = arith.constant 0 : i32
    %c0_i32_1 = arith.constant 0 : i32
    return %arg0, %c0_i32, %c0_i32_0 : i32, i32, i32
  }
}

</mosaic_0001>

<bundles_post_ra>
// kernel: tpu_custom_call.1
= control target key start
LH: loop header
LB: loop body
LE: loop exit
PB: predicated region body
PF: predicated region fallthrough
CT: control target
= control target key end

     0   :  { %10 = vsyncpa [#allocation3], 0  ;;  %s1139_s0 = inlined_call_operand.hbm [shape: f32[4,8,128], index: 0, kind: input, shape index: {}]   ;;  %s1140_s1 = inlined_call_operand.hbm [shape: f32[8,128], index: 1, kind: input, shape index: {}]   ;;  %s1141_s2 = inlined_call_operand.vmem [shape: f32[1,128], index: 2, kind: input, shape index: {}]   ;;  %s1142_s3 = inlined_call_operand.hbm [shape: s32[4,8,128], index: 3, kind: output, shape index: {0}]   ;;  %s1143_s4 = inlined_call_operand.hbm [shape: f32[4,1,128], index: 4, kind: output, shape index: {1}]  }
   0x1   :  { %12 = vsyncpa [#allocation3 + $0x1], 0 }
   0x2   :  { %13 = vsyncpa [#allocation6], 0 }
   0x3   :  { %14 = vsyncpa [#allocation4], 0 }
   0x4   :  { %16 = vsyncpa [#allocation4 + $0x1], 0 }
   0x5   :  { %17 = vsyncpa [#allocation9], 0 }
   0x6   :  { %19 = vsyncpa [#allocation9 + $0x1], 0  ;;  %s870_s15 = smov 0   ;;  %s872_s16 = smov 0  }
   0x7   :  { %s874_s17 = smov 0   ;;  %s876_s18 = smov 0  }
   0x8 LB: > { %s891_s19 = sadd.s32 4294967295, %s837_s18   ;;  %s605_s20 = sadd.s32 4294967294, %s837_s18   ;;  %s837_s18 = sphi %s876_s18, %s1165_s18   ;;  %s833_s17 = sphi %s874_s17, %s1164_s17   ;;  %s829_s16 = sphi %s872_s16, %s1163_s16   ;;  %s825_s15 = sphi %s870_s15, %s1162_s15  }
   0x9   : > { %p45_p0 = scmp.ne.s32.totalorder %s829_s16, %s825_s15  ;;  %p1144_p1 = scmp.eq.s32.totalorder %s891_s19, 0 }
   0xa   : > { %p117_p3 = scmp.eq.s32.totalorder %s605_s20, 3  ;;  %p606_p5 = scmp.ge.s32.totalorder %s837_s18, 1 }
   0xb   : > { %p900_p4 = por %p1144_p1, %p45_p0  ;;  %p150_p7 = scmp.lt.s32.totalorder %s837_s18, 5 }
   0xc   : > { %p905_p6 = por %p117_p3, %p45_p0  ;;  %s839_s24 = smov [#allocation5]  }
   0xd   : > { %s1148_s21 = scalar_select %p900_p4, 1, 0 }
   0xe   : > { %s1149_s22 = scalar_select %p905_p6, 1, 0 }
   0xf   : > { %p910_p8 = pnand %p606_p5, %p150_p7  ;;  %s163_s25 = sshll.u32 %s839_s24, 4  ;;  %s164_s25 = int_to_ptr.vmem [resolvable:$true] %s163_s25 }
  0x10   : > { %s917_s26 = sadd.s32 1, %s837_s18   ;;  %s32_s30 = sadd.s32 1, %s833_s17 }
  0x11   : > { %s1150_s23 = scalar_select %p910_p8, 1, 0 }
  0x12   : > { %p631_p9 = pneg %p910_p8  ;;  %s29_s28 = ssub.s32 %s837_s18, %s917_s26 }
  0x13   : > { %p927_p11 = scmp.eq.s32.totalorder %s29_s28, 0  ;;  %p39_p12 = scmp.ne.s32.totalorder %s833_s17, %s829_s16 }
  0x14   : > { %p921_p10 = pnand %p631_p9, %p1144_p1  ;;  %s696_s5 = scalar_lea.vmem %s164_s25, 128 }
  0x15   : > { %p697_p0 = scmp.ne.s32.totalorder %s164_s25, %s696_s5  ;;  %p704_p7 = scmp.lt.s32.totalorder %s164_s25, %s164_s25 }
  0x16   : > { %p687_p13 = pneg %p921_p10  ;;  %p705_p2 = scmp.lt.s32.totalorder %s696_s5, %s696_s5 }
  0x18   : > { %p699_p3 = pnand %p697_p0, %p687_p13  ;;  %p706_p9 = por %p705_p2, %p704_p7 }
  0x1a   : > { %p700_p5 = pneg %p699_p3 }
  0x1c   : > { %p707_p1 = pnand %p706_p9, %p700_p5 }
  0x1e   : > { %710 = shalt.err (!%p707_p1)
}
  0x1f   : > { %634 = dma.hbm_to_vmem [thread:$0]  (!%p921_p10), %s1140_s1, 128, %s164_s25, [#allocation6]  }
  0x20   : > { %s944_s8 = scalar_select %p927_p11, %s833_s17, %s32_s30  }
  0x21   : > { %p40_p1 = scmp.eq.s32.totalorder %s837_s18, 0  ;;  %p1153_p2 = scmp.eq.s32.totalorder %s891_s19, 3 }
  0x22   : > { %p647_p0 = scmp.lt.s32.totalorder %s837_s18, 4  ;;  %s177_s10 = sand.u32 1, %s833_s17  }
  0x23   : > { %p952_p13 = por %p1153_p2, %p39_p12  ;;  %p41_p3 = por %p40_p1, %p39_p12 }
  0x24   : > { %s609_s11 = sshll.u32 %s177_s10, 3  ;;  %s610_s12 = sshll.u32 %s837_s18, 7 }
  0x25   : > { %s1154_s9 = scalar_select %p952_p13, 1, 0 }
  0x26   : > { %s965_s20 = scalar_lea.hbm %s1139_s0, %s610_s12  ;;  %s181_s24 = scalar_lea.vmem [#allocation2], %s609_s11 }
  0x27   : > { %s188_s25 = sshll.u32 %s181_s24, 4  ;;  %p967_p10 = pnand %p647_p0, %p41_p3  ;;  %s189_s25 = int_to_ptr.vmem [resolvable:$true] %s188_s25 }
  0x28   : > { %s178_s28 = scalar_lea.sflag [#allocation3], %s177_s10  ;;  %s711_s29 = scalar_lea.hbm %s965_s20, 128 }
  0x29   : > { %p712_p11 = scmp.ne.s32.totalorder %s965_s20, %s711_s29  ;;  %p713_p12 = pneg %p967_p10 }
  0x2a   : > { %s716_s6 = scalar_lea.hbm %s1139_s0, 512  ;;  %p717_p9 = scmp.lt.s32.totalorder %s965_s20, %s1139_s0 }
  0x2b   : > { %p714_p5 = pnand %p713_p12, %p712_p11  ;;  %p718_p1 = scmp.lt.s32.totalorder %s716_s6, %s711_s29 }
  0x2d   : > { %p715_p7 = pneg %p714_p5  ;;  %p719_p2 = por %p718_p1, %p717_p9 }
  0x2f   : > { %p720_p0 = pnand %p719_p2, %p715_p7 }
  0x31   : > { %723 = shalt.err (!%p720_p0)
}
  0x32   : > { %s724_s12 = scalar_lea.vmem %s189_s25, 128  ;;  %s840_s10 = smov [#allocation2]  }
  0x33   : > { %p725_p3 = scmp.ne.s32.totalorder %s189_s25, %s724_s12  ;;  %s729_s13 = sshll.u32 %s840_s10, 4  ;;  %s730_s13 = int_to_ptr.vmem [resolvable:$false] %s729_s13 }
  0x34   : > { %s731_s14 = scalar_lea.vmem %s730_s13, 256  ;;  %p732_p11 = scmp.lt.s32.totalorder %s189_s25, %s730_s13 }
  0x35   : > { %p727_p6 = pnand %p725_p3, %p713_p12  ;;  %p733_p5 = scmp.lt.s32.totalorder %s731_s14, %s724_s12 }
  0x37   : > { %p728_p13 = pneg %p727_p6  ;;  %p734_p4 = por %p733_p5, %p732_p11 }
  0x39   : > { %p735_p8 = pnand %p734_p4, %p728_p13 }
  0x3b   : > { %738 = shalt.err (!%p735_p8)
}
  0x3c   : > { %638 = dma.hbm_to_vmem [thread:$0]  (!%p967_p10), %s965_s20, 128, %s189_s25, %s178_s28  }
  0x3d   : > { %p1156_p7 = scmp.ne.s32.totalorder %s1150_s23, 0 }
  0x3e   : > { %s988_s24 = sand.u32 (!%p1156_p7), 1, %s829_s16   ;;  %p1157_p4 = scmp.ne.s32.totalorder (!%p1156_p7), %s1148_s21, 0 }
  0x3f   : > { %197 = sbr.rel (%p1156_p7) target bundleno = 1239 (0x4d7), region = 32  ;;  %s612_s29 = sshll.u32 (!%p1156_p7), %s988_s24, 3 }
  0x40   : > { %s200_s30 = scalar_lea.sflag (!%p1156_p7), [#allocation3], %s988_s24  ;;  %s994_s5 = scalar_lea.vmem (!%p1156_p7), [#allocation2], %s612_s29 }
  0x44   : > { %808 = dma.done.wait (%p1157_p4), %s200_s30, 128  }
  0x45   : > { %810 = vsyncadd (%p1157_p4), %s200_s30, 4294967168  ;;  %p1158_p6 = scmp.eq.s32.totalorder %s891_s19, 0 }
  0x47   : > { %812 = dma.done.wait (%p1158_p6), [#allocation6], 128   ;;  %p1159_p8 = pmov %p1158_p6 }
  0x48   : > { %v237_v0 = vlaneseq  ;;  %v841_v2 = vmov -10000.0   ;;  %v1007_v4 = vld [vmem:[#allocation5] sm:$0xff]  ;;  %v265_v12 = vld [vmem:[%s994_s5] sm:$0x1]  ;;  %v842_v16 = vmov 0.0   ;;  %s1022_s21 = scalar_lea.vmem [#allocation7], %s612_s29 }
  0x49   : > { %814 = vsyncadd (%p1159_p8), [#allocation6], 4294967168  ;;  %v293_v34 = vld [vmem:[%s994_s5 + $0x1] sm:$0x1]  ;;  %v321_v53 = vld [vmem:[%s994_s5 + $0x2] sm:$0x1] }
  0x4a   : > { %v1004_v1 = vshrl.u32 %v237_v0, 7  ;;  %v240_v9 = vand.u32 127, %v237_v0  ;;  %s618_s25 = sshll.u32 %s891_s19, 4  ;;  %s235_s27 = scalar_lea.vmem [#allocation8], %s988_s24 }
  0x4b   : > { %s497_s28 = sshll.u32 %s235_s27, 4  ;;  %s1072_s11 = scalar_lea.hbm %s1143_s4, %s618_s25  ;;  %s1074_s28 = int_to_ptr.vmem [resolvable:$true] %s497_s28 }
  0x4c   : > { %vm244_vm0 = vcmp.eq.s32.totalorder %v1004_v1, 4  ;;  %vm241_vm1 = vcmp.eq.s32.totalorder %v1004_v1, %v240_v9  ;;  %v1013_v14 = vsub.s32 0, %v1004_v1  ;;  %s472_s12 = scalar_lea.sflag [#allocation9], %s988_s24  ;;  %s739_s10 = scalar_lea.vmem %s1074_s28, 16 }
  0x4d   : > { %v245_v3 = vsel %vm244_vm0, 0.0, %v841_v2  ;;  %v1015_v17 = vsel %vm241_vm1, 1.0, %v842_v16  ;;  %p740_p13 = scmp.ne.s32.totalorder %s1074_s28, %s739_s10  ;;  %p1160_p10 = scmp.ne.s32.totalorder %s1154_s9, 0 }
  0x4e   : > { %v246_v5 = vadd.f32 %v245_v3, %v1007_v4  ;;  %s843_s13 = smov [#allocation8]  }
  0x4f   : > { %p741_p12 = pnand %p740_p13, %p1160_p10  ;;  %s743_s14 = sshll.u32 %s843_s13, 4  ;;  %s744_s14 = int_to_ptr.vmem [resolvable:$false] %s743_s14 }
  0x50   : > { %v247_v6 = vrot.slane %v246_v5, 4  ;;  %s745_s29 = scalar_lea.vmem %s744_s14, 32  ;;  %p746_p1 = scmp.lt.s32.totalorder %s1074_s28, %s744_s14 }
  0x51   : > { %p742_p9 = pneg %p741_p12  ;;  %p747_p2 = scmp.lt.s32.totalorder %s745_s29, %s739_s10 }
  0x52   : > { %v248_v7 = vmax.f32 %v246_v5, %v247_v6 }
  0x53   : > { %p748_p0 = por %p747_p2, %p746_p1 }
  0x54   : > { %v249_v8 = vrot.slane %v248_v7, 2 }
  0x55   : > { %p749_p3 = pnand %p748_p0, %p742_p9 }
  0x56   : > { %v250_v10 = vmax.f32 %v248_v7, %v249_v8 }
  0x58   : > { %v251_v11 = vrot.slane %v250_v10, 1 }
  0x5a   : > { %v252_v13 = vmax.f32 %v250_v10, %v251_v11  ;;  %v349_v10 = vld [vmem:[%s994_s5 + $0x3] sm:$0x1] }
  0x5c   : > { %v266_v15 = vadd.f32 %v265_v12, %v252_v13  ;;  %vm253_vm2 = vcmp.eq.f32.partialorder %v246_v5, %v252_v13 }
  0x5d   : > { %v254_v18 = vsel %vm253_vm2, %v1004_v1, 8 }
  0x5e   : > { %v270_v19 = vrot.slane %v266_v15, %v1013_v14  ;;  %v255_v20 = vrot.slane %v254_v18, 4 }
  0x60   : > { %v271_v21 = vmul.f32 %v1015_v17, %v270_v19  ;;  %vm256_vm3 = vcmp.lt.s32.totalorder %v254_v18, %v255_v20 }
  0x61   : > { %v257_v22 = vsel %vm256_vm3, %v254_v18, %v255_v20 }
  0x62   : > { %272 = vadd.xlane.f32.xlu0 %v271_v21  ;;  %v258_v23 = vrot.slane %v257_v22, 2 }
  0x64   : > { %vm259_vm4 = vcmp.lt.s32.totalorder %v257_v22, %v258_v23 }
  0x65   : > { %v260_v24 = vsel %vm259_vm4, %v257_v22, %v258_v23 }
  0x66   : > { %v261_v25 = vrot.slane %v260_v24, 1 }
  0x68   : > { %vm262_vm5 = vcmp.lt.s32.totalorder %v260_v24, %v261_v25 }
  0x69   : > { %v263_v26 = vsel %vm262_vm5, %v260_v24, %v261_v25 }
  0x6a   : > { %264 = vst [vmem:[%s1022_s21] sm:$0x1] %v263_v26 }
  0xeb   : > { %v273_v27 = vpop.xlane.xlu0 %272 }
  0xec   : > { %v274_v28 = vadd.f32 %v273_v27, %v1007_v4 }
  0xee   : > { %v275_v29 = vrot.slane %v274_v28, 4 }
  0xf0   : > { %v276_v30 = vmax.f32 %v274_v28, %v275_v29 }
  0xf2   : > { %v277_v31 = vrot.slane %v276_v30, 2 }
  0xf4   : > { %v278_v32 = vmax.f32 %v276_v30, %v277_v31  ;;  %v377_v31 = vld [vmem:[%s994_s5 + $0x4] sm:$0x1] }
  0xf6   : > { %v279_v33 = vrot.slane %v278_v32, 1 }
  0xf8   : > { %v280_v35 = vmax.f32 %v278_v32, %v279_v33 }
  0xfa   : > { %vm281_vm6 = vcmp.eq.f32.partialorder %v274_v28, %v280_v35  ;;  %v294_v36 = vadd.f32 %v293_v34, %v280_v35 }
  0xfb   : > { %v282_v37 = vsel %vm281_vm6, %v1004_v1, 8 }
  0xfc   : > { %v283_v38 = vrot.slane %v282_v37, 4  ;;  %v298_v39 = vrot.slane %v294_v36, %v1013_v14 }
  0xfe   : > { %vm284_vm7 = vcmp.lt.s32.totalorder %v282_v37, %v283_v38  ;;  %v299_v40 = vmul.f32 %v1015_v17, %v298_v39 }
  0xff   : > { %v285_v41 = vsel %vm284_vm7, %v282_v37, %v283_v38 }
 0x100   : > { %v286_v42 = vrot.slane %v285_v41, 2  ;;  %300 = vadd.xlane.f32.xlu0 %v299_v40 }
 0x102   : > { %vm287_vm8 = vcmp.lt.s32.totalorder %v285_v41, %v286_v42 }
 0x103   : > { %v288_v43 = vsel %vm287_vm8, %v285_v41, %v286_v42 }
 0x104   : > { %v289_v44 = vrot.slane %v288_v43, 1 }
 0x106   : > { %vm290_vm9 = vcmp.lt.s32.totalorder %v288_v43, %v289_v44 }
 0x107   : > { %v291_v45 = vsel %vm290_vm9, %v288_v43, %v289_v44 }
 0x108   : > { %292 = vst [vmem:[%s1022_s21 + $0x1] sm:$0x1] %v291_v45 }
 0x189   : > { %v301_v46 = vpop.xlane.xlu0 %300 }
 0x18a   : > { %v302_v47 = vadd.f32 %v301_v46, %v1007_v4 }
 0x18c   : > { %v303_v48 = vrot.slane %v302_v47, 4 }
 0x18e   : > { %v304_v49 = vmax.f32 %v302_v47, %v303_v48 }
 0x190   : > { %v305_v50 = vrot.slane %v304_v49, 2 }
 0x192   : > { %v306_v51 = vmax.f32 %v304_v49, %v305_v50  ;;  %v405_v50 = vld [vmem:[%s994_s5 + $0x5] sm:$0x1] }
 0x194   : > { %v307_v52 = vrot.slane %v306_v51, 1 }
 0x196   : > { %v308_v54 = vmax.f32 %v306_v51, %v307_v52 }
 0x198   : > { %vm309_vm10 = vcmp.eq.f32.partialorder %v302_v47, %v308_v54  ;;  %v322_v55 = vadd.f32 %v321_v53, %v308_v54 }
 0x199   : > { %v310_v56 = vsel %vm309_vm10, %v1004_v1, 8 }
 0x19a   : > { %v311_v57 = vrot.slane %v310_v56, 4  ;;  %v326_v58 = vrot.slane %v322_v55, %v1013_v14 }
 0x19c   : > { %vm312_vm11 = vcmp.lt.s32.totalorder %v310_v56, %v311_v57  ;;  %v327_v59 = vmul.f32 %v1015_v17, %v326_v58 }
 0x19d   : > { %v313_v60 = vsel %vm312_vm11, %v310_v56, %v311_v57 }
 0x19e   : > { %v314_v61 = vrot.slane %v313_v60, 2  ;;  %328 = vadd.xlane.f32.xlu1 %v327_v59 }
 0x1a0   : > { %vm315_vm12 = vcmp.lt.s32.totalorder %v313_v60, %v314_v61 }
 0x1a1   : > { %v316_v62 = vsel %vm315_vm12, %v313_v60, %v314_v61 }
 0x1a2   : > { %v317_v63 = vrot.slane %v316_v62, 1 }
 0x1a4   : > { %vm318_vm13 = vcmp.lt.s32.totalorder %v316_v62, %v317_v63 }
 0x1a5   : > { %v319_v0 = vsel %vm318_vm13, %v316_v62, %v317_v63 }
 0x1a6   : > { %320 = vst [vmem:[%s1022_s21 + $0x2] sm:$0x1] %v319_v0 }
 0x227   : > { %v329_v2 = vpop.xlane.xlu1 %328 }
 0x228   : > { %v330_v3 = vadd.f32 %v329_v2, %v1007_v4 }
 0x22a   : > { %v331_v5 = vrot.slane %v330_v3, 4 }
 0x22c   : > { %v332_v6 = vmax.f32 %v330_v3, %v331_v5 }
 0x22e   : > { %v333_v7 = vrot.slane %v332_v6, 2 }
 0x230   : > { %v334_v8 = vmax.f32 %v332_v6, %v333_v7  ;;  %v433_v7 = vld [vmem:[%s994_s5 + $0x6] sm:$0x1] }
 0x232   : > { %v335_v9 = vrot.slane %v334_v8, 1 }
 0x234   : > { %v336_v11 = vmax.f32 %v334_v8, %v335_v9 }
 0x236   : > { %vm337_vm14 = vcmp.eq.f32.partialorder %v330_v3, %v336_v11  ;;  %v350_v12 = vadd.f32 %v349_v10, %v336_v11 }
 0x237   : > { %v338_v13 = vsel %vm337_vm14, %v1004_v1, 8 }
 0x238   : > { %v339_v15 = vrot.slane %v338_v13, 4  ;;  %v354_v16 = vrot.slane %v350_v12, %v1013_v14 }
 0x23a   : > { %vm340_vm15 = vcmp.lt.s32.totalorder %v338_v13, %v339_v15  ;;  %v355_v18 = vmul.f32 %v1015_v17, %v354_v16 }
 0x23b   : > { %v341_v19 = vsel %vm340_vm15, %v338_v13, %v339_v15 }
 0x23c   : > { %v342_v20 = vrot.slane %v341_v19, 2  ;;  %356 = vadd.xlane.f32.xlu1 %v355_v18 }
 0x23e   : > { %vm343_vm0 = vcmp.lt.s32.totalorder %v341_v19, %v342_v20 }
 0x23f   : > { %v344_v21 = vsel %vm343_vm0, %v341_v19, %v342_v20 }
 0x240   : > { %v345_v22 = vrot.slane %v344_v21, 1 }
 0x242   : > { %vm346_vm1 = vcmp.lt.s32.totalorder %v344_v21, %v345_v22 }
 0x243   : > { %v347_v23 = vsel %vm346_vm1, %v344_v21, %v345_v22 }
 0x244   : > { %348 = vst [vmem:[%s1022_s21 + $0x3] sm:$0x1] %v347_v23 }
 0x2c5   : > { %v357_v24 = vpop.xlane.xlu1 %356 }
 0x2c6   : > { %v358_v25 = vadd.f32 %v357_v24, %v1007_v4 }
 0x2c8   : > { %v359_v26 = vrot.slane %v358_v25, 4 }
 0x2ca   : > { %v360_v27 = vmax.f32 %v358_v25, %v359_v26  ;;  %v461_v26 = vld [vmem:[%s994_s5 + $0x7] sm:$0x1] }
 0x2cc   : > { %v361_v28 = vrot.slane %v360_v27, 2 }
 0x2ce   : > { %v362_v29 = vmax.f32 %v360_v27, %v361_v28  ;;  %v463_v28 = vld [vmem:[%s1141_s2] sm:$0x1] }
 0x2d0   : > { %v363_v30 = vrot.slane %v362_v29, 1 }
 0x2d2   : > { %v364_v32 = vmax.f32 %v362_v29, %v363_v30 }
 0x2d4   : > { %vm365_vm2 = vcmp.eq.f32.partialorder %v358_v25, %v364_v32  ;;  %v378_v33 = vadd.f32 %v377_v31, %v364_v32 }
 0x2d5   : > { %v366_v34 = vsel %vm365_vm2, %v1004_v1, 8 }
 0x2d6   : > { %v367_v35 = vrot.slane %v366_v34, 4  ;;  %v382_v36 = vrot.slane %v378_v33, %v1013_v14 }
 0x2d8   : > { %vm368_vm3 = vcmp.lt.s32.totalorder %v366_v34, %v367_v35  ;;  %v383_v37 = vmul.f32 %v1015_v17, %v382_v36 }
 0x2d9   : > { %v369_v38 = vsel %vm368_vm3, %v366_v34, %v367_v35 }
 0x2da   : > { %v370_v39 = vrot.slane %v369_v38, 2  ;;  %384 = vadd.xlane.f32.xlu0 %v383_v37 }
 0x2dc   : > { %vm371_vm4 = vcmp.lt.s32.totalorder %v369_v38, %v370_v39 }
 0x2dd   : > { %v372_v40 = vsel %vm371_vm4, %v369_v38, %v370_v39 }
 0x2de   : > { %v373_v41 = vrot.slane %v372_v40, 1 }
 0x2e0   : > { %vm374_vm5 = vcmp.lt.s32.totalorder %v372_v40, %v373_v41 }
 0x2e1   : > { %v375_v42 = vsel %vm374_vm5, %v372_v40, %v373_v41 }
 0x2e2   : > { %376 = vst [vmem:[%s1022_s21 + $0x4] sm:$0x1] %v375_v42 }
 0x363   : > { %v385_v43 = vpop.xlane.xlu0 %384 }
 0x364   : > { %v386_v44 = vadd.f32 %v385_v43, %v1007_v4 }
 0x366   : > { %v387_v45 = vrot.slane %v386_v44, 4 }
 0x368   : > { %v388_v46 = vmax.f32 %v386_v44, %v387_v45 }
 0x36a   : > { %v389_v47 = vrot.slane %v388_v46, 2 }
 0x36c   : > { %v390_v48 = vmax.f32 %v388_v46, %v389_v47 }
 0x36e   : > { %v391_v49 = vrot.slane %v390_v48, 1 }
 0x370   : > { %v392_v51 = vmax.f32 %v390_v48, %v391_v49 }
 0x372   : > { %vm393_vm6 = vcmp.eq.f32.partialorder %v386_v44, %v392_v51  ;;  %v406_v52 = vadd.f32 %v405_v50, %v392_v51 }
 0x373   : > { %v394_v53 = vsel %vm393_vm6, %v1004_v1, 8 }
 0x374   : > { %v395_v54 = vrot.slane %v394_v53, 4  ;;  %v410_v55 = vrot.slane %v406_v52, %v1013_v14 }
 0x376   : > { %vm396_vm7 = vcmp.lt.s32.totalorder %v394_v53, %v395_v54  ;;  %v411_v56 = vmul.f32 %v1015_v17, %v410_v55 }
 0x377   : > { %v397_v57 = vsel %vm396_vm7, %v394_v53, %v395_v54 }
 0x378   : > { %v398_v58 = vrot.slane %v397_v57, 2  ;;  %412 = vadd.xlane.f32.xlu1 %v411_v56 }
 0x37a   : > { %vm399_vm8 = vcmp.lt.s32.totalorder %v397_v57, %v398_v58 }
 0x37b   : > { %v400_v59 = vsel %vm399_vm8, %v397_v57, %v398_v58 }
 0x37c   : > { %v401_v60 = vrot.slane %v400_v59, 1 }
 0x37e   : > { %vm402_vm9 = vcmp.lt.s32.totalorder %v400_v59, %v401_v60 }
 0x37f   : > { %v403_v61 = vsel %vm402_vm9, %v400_v59, %v401_v60 }
 0x380   : > { %404 = vst [vmem:[%s1022_s21 + $0x5] sm:$0x1] %v403_v61 }
 0x401   : > { %v413_v62 = vpop.xlane.xlu1 %412 }
 0x402   : > { %v414_v63 = vadd.f32 %v413_v62, %v1007_v4 }
 0x404   : > { %v415_v0 = vrot.slane %v414_v63, 4 }
 0x406   : > { %v416_v2 = vmax.f32 %v414_v63, %v415_v0 }
 0x408   : > { %v417_v3 = vrot.slane %v416_v2, 2 }
 0x40a   : > { %v418_v5 = vmax.f32 %v416_v2, %v417_v3 }
 0x40c   : > { %v419_v6 = vrot.slane %v418_v5, 1 }
 0x40e   : > { %v420_v8 = vmax.f32 %v418_v5, %v419_v6 }
 0x410   : > { %vm421_vm10 = vcmp.eq.f32.partialorder %v414_v63, %v420_v8  ;;  %v434_v9 = vadd.f32 %v433_v7, %v420_v8 }
 0x411   : > { %v422_v10 = vsel %vm421_vm10, %v1004_v1, 8 }
 0x412   : > { %v423_v11 = vrot.slane %v422_v10, 4  ;;  %v438_v12 = vrot.slane %v434_v9, %v1013_v14 }
 0x414   : > { %vm424_vm11 = vcmp.lt.s32.totalorder %v422_v10, %v423_v11  ;;  %v439_v13 = vmul.f32 %v1015_v17, %v438_v12 }
 0x415   : > { %v425_v15 = vsel %vm424_vm11, %v422_v10, %v423_v11 }
 0x416   : > { %v426_v16 = vrot.slane %v425_v15, 2  ;;  %440 = vadd.xlane.f32.xlu0 %v439_v13 }
 0x418   : > { %vm427_vm12 = vcmp.lt.s32.totalorder %v425_v15, %v426_v16 }
 0x419   : > { %v428_v18 = vsel %vm427_vm12, %v425_v15, %v426_v16 }
 0x41a   : > { %v429_v19 = vrot.slane %v428_v18, 1 }
 0x41c   : > { %vm430_vm13 = vcmp.lt.s32.totalorder %v428_v18, %v429_v19 }
 0x41d   : > { %v431_v20 = vsel %vm430_vm13, %v428_v18, %v429_v19 }
 0x41e   : > { %432 = vst [vmem:[%s1022_s21 + $0x6] sm:$0x1] %v431_v20 }
 0x49f   : > { %v441_v21 = vpop.xlane.xlu0 %440 }
 0x4a0   : > { %v442_v22 = vadd.f32 %v441_v21, %v1007_v4 }
 0x4a2   : > { %v443_v23 = vrot.slane %v442_v22, 4 }
 0x4a4   : > { %v444_v14 = vmax.f32 %v442_v22, %v443_v23 }
 0x4a6   : > { %v445_v24 = vrot.slane %v444_v14, 2 }
 0x4a8   : > { %v446_v25 = vmax.f32 %v444_v14, %v445_v24 }
 0x4aa   : > { %v447_v17 = vrot.slane %v446_v25, 1 }
 0x4ac   : > { %v448_v27 = vmax.f32 %v446_v25, %v447_v17 }
 0x4ae   : > { %vm449_vm14 = vcmp.eq.f32.partialorder %v442_v22, %v448_v27  ;;  %v462_v29 = vadd.f32 %v461_v26, %v448_v27 }
 0x4af   : > { %v450_v4 = vsel %vm449_vm14, %v1004_v1, 8 }
 0x4b0   : > { %v451_v30 = vrot.slane %v450_v4, 4  ;;  %v464_v31 = vadd.f32 %v463_v28, %v462_v29 }
 0x4b2   : > { %vm452_vm15 = vcmp.lt.s32.totalorder %v450_v4, %v451_v30  ;;  %465 = vst [vmem:[%s235_s27] sm:$0x1] %v464_v31 }
 0x4b3   : > { %v453_v32 = vsel %vm452_vm15, %v450_v4, %v451_v30 }
 0x4b4   : > { %752 = shalt.err (!%p749_p3)
}
 0x4b5   : > { %s753_s30 = scalar_lea.hbm %s1072_s11, 16  ;;  %s757_s20 = scalar_lea.hbm %s1143_s4, 64 }
 0x4b6   : > { %p754_p11 = scmp.ne.s32.totalorder %s1072_s11, %s753_s30  ;;  %p758_p4 = scmp.lt.s32.totalorder %s1072_s11, %s1143_s4 }
 0x4b7   : > { %p759_p6 = scmp.lt.s32.totalorder %s757_s20, %s753_s30 }
 0x4b8   : > { %p755_p5 = pnand %p754_p11, %p1160_p10 }
 0x4b9   : > { %p760_p8 = por %p759_p6, %p758_p4 }
 0x4ba   : > { %p756_p7 = pneg %p755_p5 }
 0x4bc   : > { %p761_p13 = pnand %p760_p8, %p756_p7 }
 0x4be   : > { %764 = shalt.err (!%p761_p13)
}
 0x4bf   : > { %628 = dma.vmem_to_hbm [thread:$0]  (%p1160_p10), %s1074_s28, 16, %s1072_s11, %s472_s12   ;;  %v454_v1 = vrot.slane %v453_v32, 2 }
 0x4c0   : > { %s617_s6 = sshll.u32 %s891_s19, 7  ;;  %s484_s7 = sshll.u32 %s1022_s21, 4  ;;  %s485_s7 = int_to_ptr.vmem [resolvable:$true] %s484_s7 }
 0x4c1   : > { %vm455_vm0 = vcmp.lt.s32.totalorder %v453_v32, %v454_v1  ;;  %s1102_s14 = scalar_lea.hbm %s1142_s3, %s617_s6  ;;  %s467_s29 = scalar_lea.sflag [#allocation4], %s988_s24 }
 0x4c2   : > { %v456_v33 = vsel %vm455_vm0, %v453_v32, %v454_v1  ;;  %s765_s30 = scalar_lea.vmem %s485_s7, 128  ;;  %s844_s28 = smov [#allocation7]  }
 0x4c3   : > { %v457_v34 = vrot.slane %v456_v33, 1  ;;  %p766_p12 = scmp.ne.s32.totalorder %s485_s7, %s765_s30  ;;  %s769_s11 = sshll.u32 %s844_s28, 4  ;;  %s770_s11 = int_to_ptr.vmem [resolvable:$false] %s769_s11 }
 0x4c4   : > { %s771_s19 = scalar_lea.vmem %s770_s11, 256  ;;  %p772_p2 = scmp.lt.s32.totalorder %s485_s7, %s770_s11 }
 0x4c5   : > { %vm458_vm1 = vcmp.lt.s32.totalorder %v456_v33, %v457_v34  ;;  %p767_p9 = pnand %p766_p12, %p1160_p10  ;;  %p773_p0 = scmp.lt.s32.totalorder %s771_s19, %s765_s30 }
 0x4c6   : > { %v459_v35 = vsel %vm458_vm1, %v456_v33, %v457_v34 }
 0x4c7   : > { %460 = vst [vmem:[%s1022_s21 + $0x7] sm:$0x1] %v459_v35  ;;  %p768_p1 = pneg %p767_p9  ;;  %p774_p3 = por %p773_p0, %p772_p2 }
 0x4c9   : > { %p775_p11 = pnand %p774_p3, %p768_p1 }
 0x4cb   : > { %778 = shalt.err (!%p775_p11)
}
 0x4cc   : > { %s779_s21 = scalar_lea.hbm %s1102_s14, 128  ;;  %s783_s5 = scalar_lea.hbm %s1142_s3, 512 }
 0x4cd   : > { %p780_p5 = scmp.ne.s32.totalorder %s1102_s14, %s779_s21  ;;  %p784_p6 = scmp.lt.s32.totalorder %s1102_s14, %s1142_s3 }
 0x4ce   : > { %p785_p8 = scmp.lt.s32.totalorder %s783_s5, %s779_s21 }
 0x4cf   : > { %p781_p7 = pnand %p780_p5, %p1160_p10 }
 0x4d0   : > { %p786_p13 = por %p785_p8, %p784_p6 }
 0x4d1   : > { %p782_p4 = pneg %p781_p7 }
 0x4d3   : > { %p787_p12 = pnand %p786_p13, %p782_p4 }
 0x4d5   : > { %790 = shalt.err (!%p787_p12)
}
 0x4d6   : > { %627 = dma.vmem_to_hbm [thread:$0]  (%p1160_p10), %s485_s7, 128, %s1102_s14, %s467_s29  }
 0x4d7 PF: > { %p649_p9 = scmp.ge.s32.totalorder %s837_s18, 2  ;;  %s509_s25 = sand.u32 1, %s825_s15  }
 0x4d8   : > { %p1161_p1 = scmp.ne.s32.totalorder %s1149_s22, 0  ;;  %s510_s27 = scalar_lea.sflag [#allocation4], %s509_s25 }
 0x4da   : > { %p640_p2 = pnand %p649_p9, %p1161_p1 }
 0x4dc   : > { %p641_p0 = pneg %p640_p2 }
 0x4de   : > { %816 = dma.done.wait (%p641_p0), %s510_s27, 128  }
 0x4df   : > { %818 = vsyncadd (%p641_p0), %s510_s27, 4294967168  ;;  %s519_s6 = scalar_lea.sflag [#allocation9], %s509_s25 }
 0x4e0   : > { %820 = dma.done.wait (%p641_p0), %s519_s6, 16  }
 0x4e1   : > { %822 = vsyncadd (%p641_p0), %s519_s6, 4294967280  ;;  %p22_p10 = scmp.ge.s32.totalorder %s917_s26, 6   ;;  %s1162_s15 = smov %s829_s16 }
 0x4e2   : > { %s1163_s16 = smov %s833_s17  ;;  %s1164_s17 = smov %s944_s8 }
 0x4e3   : > { %s1165_s18 = smov %s917_s26  ;;  %24 = sbr.rel (!%p22_p10) target bundleno = 8 (0x8), region = 98 }
 0x4e8   :  { %523 = vsyncpa [#allocation3], 1 }
 0x4e9   :  { %525 = vsyncpa [#allocation3 + $0x1], 1 }
 0x4ea   :  { %526 = vsyncpa [#allocation6], 1 }
 0x4eb   :  { %527 = vsyncpa [#allocation4], 1 }
 0x4ec   :  { %529 = vsyncpa [#allocation4 + $0x1], 1 }
 0x4ed   :  { %530 = vsyncpa [#allocation9], 1 }
 0x4ee   :  { %532 = vsyncpa [#allocation9 + $0x1], 1 }

</bundles_post_ra>
